<compile_context>
chip_gen: v6e
topology: v6e:2x2x1
jax: 0.10.0
libtpu: 0.0.40
codegen_flags: <defaults>
</compile_context>

<pallas_src>
import jax
import jax.numpy as jnp
from jax.experimental import pallas as pl
from jax.experimental.pallas import tpu as pltpu


def _round_up(v, m):
    return ((v + m - 1) // m) * m


def _cdiv(a, b):
    return (a + b - 1) // b


# ----------------------------------------------------------------------------
# Per-generation hardware config (VMEM budget + tile caps).
# ----------------------------------------------------------------------------
def _hw_config():
    kind = ""
    try:
        kind = jax.devices()[0].device_kind.lower()
    except Exception:
        pass
    is_v7 = "v7" in kind
    is_v5_or_v6 = ("v5" in kind) or ("v6" in kind)
    if is_v5_or_v6:
        # 128 MiB physical VMEM on v5e/v6e -> large resident tiles.
        # Worst-case double-buffered footprint at these caps ~= 40 MiB.
        return dict(vmem_limit=96 * 1024 * 1024,
                    tm_cap=1024, tn_cap=2048, tk_cap=2048,
                    two_cores=False)
    # v7x (64 MiB physical VMEM, 2 TensorCores) or unknown chip: conservative.
    # Worst-case double-buffered footprint at these caps ~= 10 MiB << 48 MiB.
    return dict(vmem_limit=48 * 1024 * 1024,
                tm_cap=512, tn_cap=1024, tk_cap=1024,
                two_cores=is_v7)


def _pick_tile(rounded_dim, cap, align, prefer_even_grid=False):
    """Tile <= cap minimizing padding: one tile equal to the rounded dim when it
    fits, otherwise a balanced split (optionally even #tiles for 2-TC chips)."""
    if rounded_dim <= cap:
        return rounded_dim
    ntiles = _cdiv(rounded_dim, cap)
    if prefer_even_grid and ntiles % 2 == 1:
        ntiles += 1
    return _round_up(_cdiv(rounded_dim, ntiles), align)


# ----------------------------------------------------------------------------
# Kernel: out[i,j] accumulates x[i,k] @ W^T[k,j] over the K grid axis, then the
# epilogue adds bias and applies sigmoid.  The f32 output block is resident in
# VMEM across K (its block index ignores k), so it doubles as the accumulator.
# ----------------------------------------------------------------------------
def _linear_sigmoid_kernel(x_ref, w_ref, b_ref, o_ref):
    # x_ref: (tm, tk) bf16; w_ref: (tk, tn) bf16 (weight pre-transposed once in
    # the wrapper); b_ref: (1, tn) f32; o_ref: (tm, tn) f32 accumulator/output.
    k = pl.program_id(2)

    @pl.when(k == 0)
    def _init():
        o_ref[...] = jnp.zeros_like(o_ref)

    o_ref[...] += jnp.dot(x_ref[...], w_ref[...],
                          preferred_element_type=jnp.float32)

    @pl.when(k == pl.num_programs(2) - 1)
    def _finalize():
        # bias broadcast over rows, sigmoid in f32; padded columns give
        # sigmoid(0) = 0.5 and are sliced off by the wrapper.
        o_ref[...] = jax.nn.sigmoid(o_ref[...] + b_ref[...])


# ----------------------------------------------------------------------------
# Module wrapper: weight/bias prep (transpose, bf16 cast, padding) happens once.
# ----------------------------------------------------------------------------
class NetPallas:
    """Forward of `Net`: y = sigmoid(x @ W^T + b) on the last axis of x."""

    def __init__(self, weight, bias, *, compute_dtype=jnp.bfloat16,
                 tile_m=None, tile_n=None, tile_k=None):
        weight = jnp.asarray(weight)
        bias = jnp.asarray(bias)
        n, kdim = weight.shape
        assert bias.shape == (n,)
        self.c_out, self.c_in = n, kdim
        self.compute_dtype = compute_dtype
        self._hw = _hw_config()
        self._tile_m_override = tile_m

        # Kept in f32 for the small-shape XLA fallback path.
        self.weight_f32 = weight.astype(jnp.float32)
        self.bias_f32 = bias.astype(jnp.float32)

        n128 = _round_up(n, 128)
        k128 = _round_up(kdim, 128)

        # N tile: cover all of padded N when it fits (grid_j == 1) so the
        # activation streams from HBM exactly once; K tile: as deep as allowed.
        self.tn = tile_n if tile_n is not None else _pick_tile(
            n128, self._hw["tn_cap"], 128)
        self.tk = tile_k if tile_k is not None else _pick_tile(
            k128, self._hw["tk_cap"], 128)
        self.n_p = _round_up(n128, self.tn)
        self.k_p = _round_up(k128, self.tk)

        # One-time weight prep: transpose to (C_in, C_out) so the kernel issues
        # a plain MXU matmul (no per-step RHS relayout on the XLU), cast to
        # bf16, pad to tile multiples.  Amortized over every forward call.
        w_t = jnp.transpose(weight).astype(compute_dtype)
        self.w_p = jnp.pad(w_t, ((0, self.k_p - kdim), (0, self.n_p - n)))
        self.b_p = jnp.pad(self.bias_f32, (0, self.n_p - n)).reshape(1, self.n_p)

    # -- 2-D core ------------------------------------------------------------
    def _call_2d(self, x2d):
        m, kdim = x2d.shape
        hw = self._hw
        tn, tk, n_p, k_p = self.tn, self.tk, self.n_p, self.k_p

        m8 = _round_up(m, 8)
        tm = (self._tile_m_override if self._tile_m_override is not None
              else _pick_tile(m8, hw["tm_cap"], 8,
                              prefer_even_grid=hw["two_cores"]))
        m_p = _round_up(m8, tm)

        # Cast/pad x only when actually needed (skip redundant HBM passes).
        x_p = x2d
        if x_p.dtype != self.compute_dtype:
            x_p = x_p.astype(self.compute_dtype)
        if x_p.shape != (m_p, k_p):
            x_p = jnp.pad(x_p, ((0, m_p - m), (0, k_p - kdim)))

        grid = (m_p // tm, n_p // tn, k_p // tk)

        cost = pl.CostEstimate(
            flops=2 * m_p * k_p * n_p,
            transcendentals=2 * m_p * n_p,            # sigmoid ~ exp + recip
            bytes_accessed=(x_p.size * x_p.dtype.itemsize
                            + self.w_p.size * self.w_p.dtype.itemsize
                            + self.b_p.size * 4
                            + m_p * n_p * 4),
        )

        out_p = pl.pallas_call(
            _linear_sigmoid_kernel,
            out_shape=jax.ShapeDtypeStruct((m_p, n_p), jnp.float32),
            grid_spec=pltpu.PrefetchScalarGridSpec(
                num_scalar_prefetch=0,
                grid=grid,
                in_specs=[
                    pl.BlockSpec((tm, tk), lambda i, j, k: (i, k)),   # x tile
                    pl.BlockSpec((tk, tn), lambda i, j, k: (k, j)),   # W^T tile
                    pl.BlockSpec((1, tn), lambda i, j, k: (0, j)),    # bias tile
                ],
                out_specs=pl.BlockSpec((tm, tn), lambda i, j, k: (i, j)),
            ),
            compiler_params=pltpu.CompilerParams(
                dimension_semantics=("parallel", "parallel", "arbitrary"),
                vmem_limit_bytes=hw["vmem_limit"],
            ),
            cost_estimate=cost,
        )(x_p, self.w_p, self.b_p)

        return out_p[:m, :self.c_out]

    # -- user-facing forward ---------------------------------------------------
    def __call__(self, x, *, use_pallas=None):
        lead = x.shape[:-1]
        m = 1
        for d in lead:
            m *= d

        if use_pallas is None:
            # Pallas only pays off once per-grid-step (~0.35 us) + pad/cast
            # passes are amortized: require ~64 MFLOPs and a non-trivial M.
            flops = 2 * m * self.c_in * self.c_out
            use_pallas = (flops >= 64 * 1024 * 1024) and (m >= 128)

        if not use_pallas:
            # Toy / mid sizes: fused XLA einsum+sigmoid is strictly faster.
            y = jax.nn.sigmoid(
                jnp.einsum("...i,oi->...o", x.astype(jnp.float32),
                           self.weight_f32) + self.bias_f32)
            return y

        out2d = self._call_2d(x.reshape(m, self.c_in))
        return out2d.reshape(*lead, self.c_out)


def net_forward(x, weight, bias, *, use_pallas=None):
    """One-shot convenience wrapper (prefer keeping a NetPallas instance so the
    weight transpose/cast/pad is amortized across calls)."""
    return NetPallas(weight, bias)(x, use_pallas=use_pallas)


if __name__ == "__main__":
    key = jax.random.PRNGKey(0)

    # --- Test 1: exact module spec: in_channel=3, out_channel=2, x (1,1,1,3).
    in_channel, out_channel = 3, 2
    k1, k2, k3, key = jax.random.split(key, 4)
    bound = 1.0 / (in_channel ** 0.5)        # PyTorch nn.Linear init bound
    w1 = jax.random.uniform(k1, (out_channel, in_channel),
                            minval=-bound, maxval=bound, dtype=jnp.float32)
    b1 = jax.random.uniform(k2, (out_channel,),
                            minval=-bound, maxval=bound, dtype=jnp.float32)
    x1 = jax.random.normal(k3, (1, 1, 1, in_channel), dtype=jnp.float32)

    net1 = NetPallas(w1, b1)
    y1 = net1(x1, use_pallas=True)           # force the Pallas kernel
    jax.block_until_ready(y1)
    y1_ref = jax.nn.sigmoid(jnp.einsum("...i,oi->...o", x1, w1) + b1)
    assert y1.shape == (1, 1, 1, out_channel)
    assert jnp.allclose(y1, y1_ref, atol=2e-2), "mismatch vs reference (spec shape)"

    # Auto heuristic should route this toy shape to the fused XLA path.
    y1_auto = net1(x1)
    jax.block_until_ready(y1_auto)
    assert jnp.allclose(y1_auto, y1_ref, atol=1e-5), "mismatch on fallback path"

    # --- Test 2: multi-tile grid (small tile overrides exercise M/N tiling,
    #             K accumulation into the resident output block, and padding).
    c_in2, c_out2 = 384, 320
    k4, k5, k6, key = jax.random.split(key, 4)
    bound2 = 1.0 / (c_in2 ** 0.5)
    w2 = jax.random.uniform(k4, (c_out2, c_in2),
                            minval=-bound2, maxval=bound2, dtype=jnp.float32)
    b2 = jax.random.uniform(k5, (c_out2,),
                            minval=-bound2, maxval=bound2, dtype=jnp.float32)
    x2 = jax.random.normal(k6, (2, 3, 44, c_in2), dtype=jnp.float32)

    net2 = NetPallas(w2, b2, tile_m=128, tile_n=128, tile_k=128)
    y2 = net2(x2, use_pallas=True)
    jax.block_until_ready(y2)
    y2_ref = jax.nn.sigmoid(jnp.einsum("...i,oi->...o", x2, w2) + b2)
    assert y2.shape == (2, 3, 44, c_out2)
    assert jnp.allclose(y2, y2_ref, atol=2e-2), "mismatch vs reference (tiled shape)"

    # --- Test 3: default (auto-selected) tiles through the Pallas path.
    net3 = NetPallas(w2, b2)
    y3 = net3(x2, use_pallas=True)
    jax.block_until_ready(y3)
    assert jnp.allclose(y3, y2_ref, atol=2e-2), "mismatch vs reference (auto tiles)"

    print("KERNEL_OK")
</pallas_src>

<mosaic_0001>
module attributes {stable_mosaic.version = 11 : i64} {
  func.func @_linear_sigmoid_kernel(%arg0: i32, %arg1: i32, %arg2: i32, %arg3: memref<8x128xbf16, #tpu.memory_space<vmem>>, %arg4: memref<128x128xbf16, #tpu.memory_space<vmem>>, %arg5: memref<1x128xf32, #tpu.memory_space<vmem>>, %arg6: memref<8x128xf32, #tpu.memory_space<vmem>>) attributes {dimension_semantics = [#tpu.dimension_semantics<parallel>, #tpu.dimension_semantics<parallel>, #tpu.dimension_semantics<arbitrary>], iteration_bounds = array<i64: 1, 1, 1>, scalar_prefetch = 0 : i64, scratch_operands = 0 : i64, tpu.core_type = #tpu.core_type<tc>, window_params = [{transform_indices = @transform_0, window_bounds = array<i64: 8, 128>}, {transform_indices = @transform_1, window_bounds = array<i64: 128, 128>}, {transform_indices = @transform_2, window_bounds = array<i64: 1, 128>}, {transform_indices = @transform_3, window_bounds = array<i64: 8, 128>}]} {
    %c0_i32 = arith.constant 0 : i32
    %0 = arith.cmpi eq, %arg2, %c0_i32 : i32
    %1 = arith.extui %0 : i1 to i32
    %c0_i32_0 = arith.constant 0 : i32
    %2 = arith.cmpi ne, %1, %c0_i32_0 : i32
    scf.if %2 {
      %cst_10 = arith.constant 0.000000e+00 : f32
      %12 = vector.broadcast %cst_10 : f32 to vector<8x128xf32>
      %c0_11 = arith.constant 0 : index
      %c0_12 = arith.constant 0 : index
      %13 = vector.load %arg6[%c0_11, %c0_12] : memref<8x128xf32, #tpu.memory_space<vmem>>, vector<8x128xf32>
      tpu.vector_store %arg6[%c0_11, %c0_12], %12 {strides = array<i32>} : memref<8x128xf32, #tpu.memory_space<vmem>>, vector<8x128xf32>,
    } else {
    }
    %c0 = arith.constant 0 : index
    %c0_1 = arith.constant 0 : index
    %3 = vector.load %arg6[%c0, %c0_1] : memref<8x128xf32, #tpu.memory_space<vmem>>, vector<8x128xf32>
    %c0_2 = arith.constant 0 : index
    %c0_3 = arith.constant 0 : index
    %4 = vector.load %arg3[%c0_2, %c0_3] : memref<8x128xbf16, #tpu.memory_space<vmem>>, vector<8x128xbf16>
    %c0_4 = arith.constant 0 : index
    %c0_5 = arith.constant 0 : index
    %5 = vector.load %arg4[%c0_4, %c0_5] : memref<128x128xbf16, #tpu.memory_space<vmem>>, vector<128x128xbf16>
    %cst = arith.constant dense<0.000000e+00> : vector<8x128xf32>
    %6 = tpu.matmul %4, %5, %cst {dimension_numbers = #tpu.dot_dimension_numbers<[1], [0], [0], [1], [0, 0, 1, 1], [], []>} : vector<8x128xbf16>, vector<128x128xbf16>, vector<8x128xf32> -> vector<8x128xf32>
    %7 = arith.addf %3, %6 : vector<8x128xf32>
    %c0_6 = arith.constant 0 : index
    %c0_7 = arith.constant 0 : index
    %8 = vector.load %arg6[%c0_6, %c0_7] : memref<8x128xf32, #tpu.memory_space<vmem>>, vector<8x128xf32>
    tpu.vector_store %arg6[%c0_6, %c0_7], %7 {strides = array<i32>} : memref<8x128xf32, #tpu.memory_space<vmem>>, vector<8x128xf32>,
    %c0_i32_8 = arith.constant 0 : i32
    %9 = arith.cmpi eq, %arg2, %c0_i32_8 : i32
    %10 = arith.extui %9 : i1 to i32
    %c0_i32_9 = arith.constant 0 : i32
    %11 = arith.cmpi ne, %10, %c0_i32_9 : i32
    scf.if %11 {
      %c0_10 = arith.constant 0 : index
      %c0_11 = arith.constant 0 : index
      %12 = vector.load %arg6[%c0_10, %c0_11] : memref<8x128xf32, #tpu.memory_space<vmem>>, vector<8x128xf32>
      %c0_12 = arith.constant 0 : index
      %c0_13 = arith.constant 0 : index
      %13 = vector.load %arg5[%c0_12, %c0_13] : memref<1x128xf32, #tpu.memory_space<vmem>>, vector<1x128xf32>
      %14 = vector.broadcast %13 : vector<1x128xf32> to vector<8x128xf32>
      %15 = arith.addf %12, %14 : vector<8x128xf32>
      %16 = arith.negf %15 : vector<8x128xf32>
      %17 = math.exp %16 : vector<8x128xf32>
      %cst_14 = arith.constant 1.000000e+00 : f32
      %18 = vector.broadcast %cst_14 : f32 to vector<8x128xf32>
      %19 = arith.addf %18, %17 : vector<8x128xf32>
      %20 = arith.divf %18, %19 : vector<8x128xf32>
      %c0_15 = arith.constant 0 : index
      %c0_16 = arith.constant 0 : index
      %21 = vector.load %arg6[%c0_15, %c0_16] : memref<8x128xf32, #tpu.memory_space<vmem>>, vector<8x128xf32>
      tpu.vector_store %arg6[%c0_15, %c0_16], %20 {strides = array<i32>} : memref<8x128xf32, #tpu.memory_space<vmem>>, vector<8x128xf32>,
    } else {
    }
    return
  }
  func.func @transform_0(%arg0: i32, %arg1: i32, %arg2: i32) -> (i32, i32) {
    %c0_i32 = arith.constant 0 : i32
    return %arg0, %arg2 : i32, i32
  }
  func.func @transform_1(%arg0: i32, %arg1: i32, %arg2: i32) -> (i32, i32) {
    %c0_i32 = arith.constant 0 : i32
    return %arg2, %arg1 : i32, i32
  }
  func.func @transform_2(%arg0: i32, %arg1: i32, %arg2: i32) -> (i32, i32) {
    %c0_i32 = arith.constant 0 : i32
    %c0_i32_0 = arith.constant 0 : i32
    return %c0_i32, %arg1 : i32, i32
  }
  func.func @transform_3(%arg0: i32, %arg1: i32, %arg2: i32) -> (i32, i32) {
    %c0_i32 = arith.constant 0 : i32
    return %arg0, %arg1 : i32, i32
  }
}

</mosaic_0001>

<bundles_post_ra>
// kernel: tpu_custom_call.1
= control target key start
LH: loop header
LB: loop body
LE: loop exit
PB: predicated region body
PF: predicated region fallthrough
CT: control target
= control target key end

     0   :  { %8 = vsyncpa [#allocation3], 0  ;;  %s353_s0 = inlined_call_operand.hbm [shape: bf16[8,128], index: 0, kind: input, shape index: {}]   ;;  %s354_s1 = inlined_call_operand.hbm [shape: bf16[128,128], index: 1, kind: input, shape index: {}]   ;;  %s355_s2 = inlined_call_operand.vmem [shape: f32[1,128], index: 2, kind: input, shape index: {}]   ;;  %s356_s3 = inlined_call_operand.hbm [shape: f32[8,128], index: 3, kind: output, shape index: {}]  }
   0x1   :  { %9 = vsyncpa [#allocation6], 0 }
   0x2   :  { %10 = vsyncpa [#allocation4], 0  ;;  %s314_s12 = smov [#allocation2]   ;;  %s315_s14 = smov [#allocation5]  }
   0x3   :  { %s17_s13 = sshll.u32 %s314_s12, 4  ;;  %s26_s15 = sshll.u32 %s315_s14, 4  ;;  %s18_s13 = int_to_ptr.vmem [resolvable:$true] %s17_s13  ;;  %s27_s15 = int_to_ptr.vmem [resolvable:$true] %s26_s15 }
   0x4   :  { %s256_s16 = scalar_lea.vmem %s18_s13, 64  ;;  %p261_p1 = scmp.lt.s32.totalorder %s18_s13, %s18_s13 }
   0x5   :  { %p257_p0 = scmp.ne.s32.totalorder %s18_s13, %s256_s16  ;;  %p262_p2 = scmp.lt.s32.totalorder %s256_s16, %s256_s16 }
   0x7   :  { %p263_p3 = por %p262_p2, %p261_p1 }
   0x9   :  { %p264_p4 = pnand %p263_p3, %p257_p0 }
   0xb   :  { %267 = shalt.err (!%p264_p4)
}
   0xc   :  { %20 = dma.hbm_to_vmem [thread:$0]  %s353_s0, 64, %s18_s13, [#allocation3]  }
   0xd   :  { %s276_s19 = scalar_lea.vmem %s27_s15, 1024  ;;  %p281_p6 = scmp.lt.s32.totalorder %s27_s15, %s27_s15 }
   0xe   :  { %p277_p5 = scmp.ne.s32.totalorder %s27_s15, %s276_s19  ;;  %p282_p7 = scmp.lt.s32.totalorder %s276_s19, %s276_s19 }
  0x10   :  { %p283_p8 = por %p282_p7, %p281_p6 }
  0x12   :  { %p284_p9 = pnand %p283_p8, %p277_p5 }
  0x14   :  { %287 = shalt.err (!%p284_p9)
}
  0x15   :  { %s316_s20 = smov 64   ;;  %s317_s21 = smov 4  }
  0x16   :  { %32 = dma.hbm_to_vmem [thread:$0]  %s354_s1, 1024, %s27_s15, [#allocation6], %s316_s20, %s316_s20, %s317_s21  }
  0x17   :  { %308 = dma.done.wait [#allocation3], 64  }
  0x18   :  { %309 = vsyncadd [#allocation3], 4294967232 }
  0x19   :  { %310 = dma.done.wait [#allocation6], 1024  }
  0x1a   :  { %311 = vsyncadd [#allocation6], 4294966272  ;;  %v318_v0 = vmov 0.0   ;;  %vm319_vm0 = vmmov 0   ;;  %v236_v1 = vld [vmem:[#allocation5 + $0x38] sm:$0xff]   ;;  %v237_v2 = vld [vmem:[#allocation5 + $0x30] sm:$0xff]  }
  0x1b   :  { %209 = vmatprep.subr.bf16.mxu0 %v318_v0  ;;  %225 = vmatprep.mubr.msk.bf16.mxu0 %vm319_vm0, %v318_v0  ;;  %v238_v3 = vld [vmem:[#allocation5 + $0x28] sm:$0xff]   ;;  %v239_v4 = vld [vmem:[#allocation5 + $0x20] sm:$0xff]   ;;  %v240_v5 = vld [vmem:[#allocation5 + $0x18] sm:$0xff]   ;;  %s320_s24 = smov [#allocation7]  }
  0x1c   :  { %210 = vmatpush3.bf16.msra.mxu0 %v236_v1  ;;  %v241_v6 = vld [vmem:[#allocation5 + $0x10] sm:$0xff]   ;;  %v242_v7 = vld [vmem:[#allocation5 + $0x8] sm:$0xff]   ;;  %v243_v8 = vld [vmem:[#allocation5] sm:$0xff]   ;;  %s180_s25 = sshll.u32 %s320_s24, 4  ;;  %s181_s25 = int_to_ptr.vmem [resolvable:$true] %s180_s25 }
  0x1d   :  { %211 = vmatprep.subr.bf16.mxu0 %v318_v0  ;;  %v48_v9 = vld [vmem:[#allocation2] sm:$0xf]  ;;  %s288_s26 = scalar_lea.vmem %s181_s25, 128  ;;  %p293_p11 = scmp.lt.s32.totalorder %s181_s25, %s181_s25 }
  0x1e   :  { %v198_v11 = vld [vmem:[%s355_s2] ss:$0 sm:$0xff]  ;;  %p289_p10 = scmp.ne.s32.totalorder %s181_s25, %s288_s26  ;;  %p294_p12 = scmp.lt.s32.totalorder %s288_s26, %s288_s26 }
  0x20   :  { %212 = vmatpush3.bf16.msra.mxu0 %v237_v2  ;;  %p295_p13 = por %p294_p12, %p293_p11 }
  0x21   :  { %213 = vmatprep.subr.bf16.mxu0 %v318_v0 }
  0x22   :  { %p296_p0 = pnand %p295_p13, %p289_p10 }
  0x24   :  { %214 = vmatpush3.bf16.msra.mxu0 %v238_v3 }
  0x25   :  { %215 = vmatprep.subr.bf16.mxu0 %v318_v0 }
  0x28   :  { %216 = vmatpush3.bf16.msra.mxu0 %v239_v4 }
  0x29   :  { %217 = vmatprep.subr.bf16.mxu0 %v318_v0 }
  0x2c   :  { %218 = vmatpush3.bf16.msra.mxu0 %v240_v5 }
  0x2d   :  { %219 = vmatprep.subr.bf16.mxu0 %v318_v0 }
  0x30   :  { %220 = vmatpush3.bf16.msra.mxu0 %v241_v6 }
  0x31   :  { %221 = vmatprep.subr.bf16.mxu0 %v318_v0 }
  0x34   :  { %222 = vmatpush3.bf16.msra.mxu0 %v242_v7 }
  0x35   :  { %223 = vmatprep.subr.bf16.mxu0 %v318_v0 }
  0x38   :  { %224 = vmatpush3.bf16.msra.mxu0 %v243_v8 }
  0x3b   :  { %226 = vmatmul.mubr.bf16.vlgmr.msra.gmra.mxu0 %v48_v9 }
  0xfb   :  { %v147_v10 = vpop.f32.mrf.mxu0 }
  0xfc   :  { %v166_v13 = vadd.f32 %v198_v11, %v147_v10 }
  0xfd   :  { %v227_v12 = vpop.f32.mrf.mxu0 }
  0xfe   :  { %v199_v15 = vmul.f32 -1.442695, %v166_v13 }
  0xff   :  { %v150_v14 = vpop.f32.mrf.mxu0 }
 0x100   :  { %244 = vpow2.f32 %v199_v15 }
 0x101   :  { %v228_v16 = vpop.f32.mrf.mxu0 }
 0x10d   :  { %v245_v17 = vpop.eup %244 }
 0x10e   :  { %v170_v18 = vadd.f32 1.0, %v245_v17 }
 0x110   :  { %246 = vrcp.f32 %v170_v18 }
 0x11d   :  { %v247_v19 = vpop.eup %246 }
 0x11e   :  { %173 = vst [vmem:[#allocation7] sm:$0xff] %v247_v19 }
 0x11f   :  { %299 = shalt.err (!%p296_p0)
}
 0x120   :  { %183 = dma.vmem_to_hbm [thread:$0]  %s181_s25, 128, %s356_s3, [#allocation4]  }
 0x121   :  { %312 = dma.done.wait [#allocation4], 128  }
 0x122   :  { %313 = vsyncadd [#allocation4], 4294967168 }
 0x123   :  { %187 = vsyncpa [#allocation3], 1 }
 0x124   :  { %188 = vsyncpa [#allocation6], 1 }
 0x125   :  { %189 = vsyncpa [#allocation4], 1 }

</bundles_post_ra>
